<compile_context>
chip_gen: v7x
topology: tpu7x:2x2x1
jax: 0.10.0
libtpu: 0.0.40
codegen_flags: <defaults>
</compile_context>

<pallas_src>
import functools

import jax
import jax.numpy as jnp
from jax.experimental import pallas as pl
from jax.experimental.pallas import tpu as pltpu


def policy_act_kernel(x_ref, w_ref, b_ref, out_ref, *, num_actions):
    """x_ref: [TB, H] features.
    w_ref: [H, A+1] fused weight (actor cols then critic col), pre-transposed.
    b_ref: [1, A+1] fused bias.
    out_ref: [TB, 3] f32 -> (value, action_log_prob, bitcast(action)).
    """
    x = x_ref[...]                                   # [TB, H]   f32
    w = w_ref[...]                                   # [H, A+1]  f32
    b = b_ref[...]                                   # [1, A+1]  f32

    # Native [M,K] x [K,N] matmul on the MXU; bias add rides the VPU (free slot).
    out = jax.lax.dot_general(
        x, w,
        dimension_numbers=(((1,), (0,)), ((), ())),
        preferred_element_type=jnp.float32) + b      # [TB, A+1]

    logits = out[:, :num_actions]                    # [TB, A]
    value = out[:, num_actions:num_actions + 1]      # [TB, 1]

    # ---- Categorical: mode() == argmax (first max index, like torch) ----
    TB, A = logits.shape
    m = jnp.max(logits, axis=-1, keepdims=True)      # [TB, 1]
    col_ids = jax.lax.broadcasted_iota(jnp.int32, (TB, A), 1)
    action = jnp.min(jnp.where(logits == m, col_ids, A),
                     axis=-1, keepdims=True).astype(jnp.int32)      # [TB, 1]

    # ---- log_prob(mode): the mode's shifted logit is exactly 0, so
    #      log_prob = -log(sum(exp(logits - max))) (exact, incl. ties) ----
    lse = jnp.log(jnp.sum(jnp.exp(logits - m), axis=-1, keepdims=True))  # [TB, 1]

    # Single packed output: direct slice stores, no lane concatenate.
    out_ref[:, 0:1] = value
    out_ref[:, 1:2] = -lse
    out_ref[:, 2:3] = pltpu.bitcast(action, jnp.float32)


def fuse_policy_head_params(w_action, b_action, w_critic, b_critic):
    """One-time parameter prep (hoisted out of the per-step hot path).

    w_action: [A, H]; b_action: [A]; w_critic: [1, H]; b_critic: [1].
    Returns (w_t [H, A+1], b_fused [1, A+1]), both f32.
    """
    w_fused = jnp.concatenate(
        [w_action.astype(jnp.float32), w_critic.astype(jnp.float32)], axis=0)  # [A+1, H]
    w_t = jnp.transpose(w_fused)                                               # [H, A+1]
    b_fused = jnp.concatenate(
        [b_action.astype(jnp.float32), b_critic.astype(jnp.float32)],
        axis=0)[None, :]                                                       # [1, A+1]
    return w_t, b_fused


def policy_act(features, w_t, b_fused, *, tile_b=None):
    """features: [B, H] f32; w_t: [H, A+1]; b_fused: [1, A+1].
    Returns (value [B,1] f32, action [B,1] i32, action_log_probs [B,1] f32).
    """
    B, H = features.shape
    A1 = w_t.shape[1]
    A = A1 - 1

    # TILE_B: multiple of 8 (sublane) for large batches; whole batch when small.
    # For v7x (64 MiB VMEM) keep double-buffered feature blocks well under the
    # scoped limit, e.g. tile_b <= 4096 for H=512 f32.
    if tile_b is None:
        tile_b = B if (B <= 1024 or B % 8 != 0) else 1024
    grid = (pl.cdiv(B, tile_b),)

    kernel = functools.partial(policy_act_kernel, num_actions=A)

    fout = pl.pallas_call(
        kernel,
        out_shape=jax.ShapeDtypeStruct((B, 3), jnp.float32),
        grid=grid,
        in_specs=[
            pl.BlockSpec((tile_b, H), lambda i: (i, 0)),   # features: tiled over batch
            pl.BlockSpec((H, A1), lambda i: (0, 0)),       # fused weight: resident
            pl.BlockSpec((1, A1), lambda i: (0, 0)),       # fused bias: resident
        ],
        out_specs=pl.BlockSpec((tile_b, 3), lambda i: (i, 0)),
        compiler_params=pltpu.CompilerParams(
            dimension_semantics=("parallel",)),            # both v7x TensorCores
    )(features.astype(jnp.float32), w_t, b_fused)

    value = fout[:, 0:1]
    action_log_probs = fout[:, 1:2]
    action = jax.lax.bitcast_convert_type(fout[:, 2:3], jnp.int32)
    return value, action, action_log_probs


def orthogonal(key, out_features, in_features, gain=1.0):
    """Deterministic orthogonal init (rows orthonormal), like nn.init.orthogonal_."""
    a = jax.random.normal(key, (max(out_features, in_features),
                                min(out_features, in_features)), jnp.float32)
    q, r = jnp.linalg.qr(a)
    q = q * jnp.sign(jnp.diag(r))[None, :]
    if out_features < in_features:
        q = q.T
    return gain * q[:out_features, :in_features]


if __name__ == "__main__":
    # Small shapes implied by the module: net.output_size (hidden) and dim_actions.
    B, H, A = 8, 32, 4

    key = jax.random.PRNGKey(0)
    k_feat, k_wa, k_wc = jax.random.split(key, 3)

    features = jax.random.normal(k_feat, (B, H), jnp.float32)

    # CategoricalNet linear: orthogonal(gain=0.01), bias 0 (habitat convention)
    w_action = orthogonal(k_wa, A, H, gain=0.01)
    b_action = jnp.zeros((A,), jnp.float32)

    # CriticHead: orthogonal(gain=1.0), bias 0
    w_critic = orthogonal(k_wc, 1, H, gain=1.0)
    b_critic = jnp.zeros((1,), jnp.float32)

    # TODO(synk): backbone `net(observations, rnn_hidden_states, prev_actions,
    # masks)` is not defined in the reference module; features are the input.
    # For maximum efficiency this head should be fused into the backbone's
    # final-layer kernel so the features never round-trip through HBM.

    # One-time parameter fusion (not in the per-step hot path).
    w_t, b_fused = fuse_policy_head_params(w_action, b_action, w_critic, b_critic)
    w_t, b_fused = jax.block_until_ready((w_t, b_fused))

    value, action, action_log_probs = policy_act(features, w_t, b_fused)
    jax.block_until_ready((value, action, action_log_probs))

    # Reference check in plain JAX
    logits_ref = features @ w_action.T + b_action
    lp_ref = jax.nn.log_softmax(logits_ref, axis=-1)
    act_ref = jnp.argmax(logits_ref, axis=-1)
    val_ref = features @ w_critic.T + b_critic
    logp_ref = jnp.take_along_axis(lp_ref, act_ref[:, None], axis=-1)

    assert jnp.allclose(value, val_ref, atol=1e-5)
    assert jnp.array_equal(action[:, 0], act_ref.astype(jnp.int32))
    assert jnp.allclose(action_log_probs, logp_ref, atol=1e-5)

    print("KERNEL_OK")
</pallas_src>

<mosaic_0001>
module attributes {stable_mosaic.version = 11 : i64} {
  func.func @policy_act_kernel(%arg0: i32, %arg1: memref<8x32xf32, #tpu.memory_space<vmem>>, %arg2: memref<32x5xf32, #tpu.memory_space<vmem>>, %arg3: memref<1x5xf32, #tpu.memory_space<vmem>>, %arg4: memref<8x3xf32, #tpu.memory_space<vmem>>) attributes {dimension_semantics = [#tpu.dimension_semantics<parallel>], iteration_bounds = array<i64: 1>, scalar_prefetch = 0 : i64, scratch_operands = 0 : i64, tpu.core_type = #tpu.core_type<tc>, window_params = [{transform_indices = @transform_0, window_bounds = array<i64: 8, 32>}, {pipeline_mode = #tpu.pipeline_mode<synchronous>, transform_indices = @transform_1, window_bounds = array<i64: 32, 5>}, {pipeline_mode = #tpu.pipeline_mode<synchronous>, transform_indices = @transform_2, window_bounds = array<i64: 1, 5>}, {transform_indices = @transform_3, window_bounds = array<i64: 8, 3>}]} {
    %c0 = arith.constant 0 : index
    %c0_0 = arith.constant 0 : index
    %0 = vector.load %arg1[%c0, %c0_0] : memref<8x32xf32, #tpu.memory_space<vmem>>, vector<8x32xf32>
    %c0_1 = arith.constant 0 : index
    %c0_2 = arith.constant 0 : index
    %1 = vector.load %arg2[%c0_1, %c0_2] : memref<32x5xf32, #tpu.memory_space<vmem>>, vector<32x5xf32>
    %c0_3 = arith.constant 0 : index
    %c0_4 = arith.constant 0 : index
    %2 = vector.load %arg3[%c0_3, %c0_4] : memref<1x5xf32, #tpu.memory_space<vmem>>, vector<1x5xf32>
    %cst = arith.constant dense<0.000000e+00> : vector<8x5xf32>
    %3 = tpu.matmul %0, %1, %cst {dimension_numbers = #tpu.dot_dimension_numbers<[1], [0], [0], [1], [0, 0, 1, 1], [], []>} : vector<8x32xf32>, vector<32x5xf32>, vector<8x5xf32> -> vector<8x5xf32>
    %4 = vector.broadcast %2 : vector<1x5xf32> to vector<8x5xf32>
    %5 = arith.addf %3, %4 : vector<8x5xf32>
    %6 = vector.extract_strided_slice %5 {offsets = [0, 0], sizes = [8, 4], strides = [1, 1]} : vector<8x5xf32> to vector<8x4xf32>
    %7 = vector.extract_strided_slice %5 {offsets = [0, 4], sizes = [8, 1], strides = [1, 1]} : vector<8x5xf32> to vector<8x1xf32>
    %cst_5 = arith.constant dense<0xFF800000> : vector<8xf32>
    %8 = vector.multi_reduction <maximumf>, %6, %cst_5 [1] : vector<8x4xf32> to vector<8xf32>
    %9 = vector.shape_cast %8 : vector<8xf32> to vector<8x1xf32>
    %10 = tpu.iota {dimensions = array<i32: 1>} : vector<8x4xi32>
    %11 = vector.broadcast %9 : vector<8x1xf32> to vector<8x4xf32>
    %12 = arith.cmpf oeq, %6, %11 : vector<8x4xf32>
    %c4_i32 = arith.constant 4 : i32
    %13 = vector.broadcast %c4_i32 : i32 to vector<8x4xi32>
    %14 = arith.select %12, %10, %13 : vector<8x4xi1>, vector<8x4xi32>
    %cst_6 = arith.constant dense<2147483647> : vector<8xi32>
    %15 = vector.multi_reduction <minsi>, %14, %cst_6 [1] : vector<8x4xi32> to vector<8xi32>
    %16 = vector.shape_cast %15 : vector<8xi32> to vector<8x1xi32>
    %17 = vector.broadcast %9 : vector<8x1xf32> to vector<8x4xf32>
    %18 = arith.subf %6, %17 : vector<8x4xf32>
    %19 = math.exp %18 : vector<8x4xf32>
    %cst_7 = arith.constant dense<0.000000e+00> : vector<8xf32>
    %20 = vector.multi_reduction <add>, %19, %cst_7 [1] : vector<8x4xf32> to vector<8xf32>
    %21 = vector.shape_cast %20 : vector<8xf32> to vector<8x1xf32>
    %22 = math.log %21 : vector<8x1xf32>
    %c0_8 = arith.constant 0 : index
    %c0_9 = arith.constant 0 : index
    %23 = vector.load %arg4[%c0_8, %c0_9] : memref<8x3xf32, #tpu.memory_space<vmem>>, vector<8x1xf32>
    tpu.vector_store %arg4[%c0_8, %c0_9], %7 {strides = array<i32>} : memref<8x3xf32, #tpu.memory_space<vmem>>, vector<8x1xf32>,
    %cst_10 = arith.constant 0.000000e+00 : f32
    %24 = vector.broadcast %cst_10 : f32 to vector<8x1xf32>
    %25 = arith.subf %24, %22 : vector<8x1xf32>
    %c0_11 = arith.constant 0 : index
    %c1 = arith.constant 1 : index
    %26 = vector.load %arg4[%c0_11, %c1] : memref<8x3xf32, #tpu.memory_space<vmem>>, vector<8x1xf32>
    tpu.vector_store %arg4[%c0_11, %c1], %25 {strides = array<i32>} : memref<8x3xf32, #tpu.memory_space<vmem>>, vector<8x1xf32>,
    %27 = tpu.bitcast %16 : vector<8x1xi32> -> vector<8x1xf32>
    %c0_12 = arith.constant 0 : index
    %c2 = arith.constant 2 : index
    %28 = vector.load %arg4[%c0_12, %c2] : memref<8x3xf32, #tpu.memory_space<vmem>>, vector<8x1xf32>
    tpu.vector_store %arg4[%c0_12, %c2], %27 {strides = array<i32>} : memref<8x3xf32, #tpu.memory_space<vmem>>, vector<8x1xf32>,
    return
  }
  func.func @transform_0(%arg0: i32) -> (i32, i32) {
    %c0_i32 = arith.constant 0 : i32
    %c0_i32_0 = arith.constant 0 : i32
    return %arg0, %c0_i32 : i32, i32
  }
  func.func @transform_1(%arg0: i32) -> (i32, i32) {
    %c0_i32 = arith.constant 0 : i32
    %c0_i32_0 = arith.constant 0 : i32
    %c0_i32_1 = arith.constant 0 : i32
    return %c0_i32, %c0_i32_0 : i32, i32
  }
  func.func @transform_2(%arg0: i32) -> (i32, i32) {
    %c0_i32 = arith.constant 0 : i32
    %c0_i32_0 = arith.constant 0 : i32
    %c0_i32_1 = arith.constant 0 : i32
    return %c0_i32, %c0_i32_0 : i32, i32
  }
  func.func @transform_3(%arg0: i32) -> (i32, i32) {
    %c0_i32 = arith.constant 0 : i32
    %c0_i32_0 = arith.constant 0 : i32
    return %arg0, %c0_i32 : i32, i32
  }
}

</mosaic_0001>

<bundles_post_ra>
// kernel: tpu_custom_call.1
= control target key start
LH: loop header
LB: loop body
LE: loop exit
PB: predicated region body
PF: predicated region fallthrough
CT: control target
= control target key end

     0   :  { %v179_v0 = vmov 0.0|0.0   ;;  %vm180_vm0 = vmmov 0   ;;  %v181_v4 = vmov 0.0   ;;  %vm26_vm1 = vcmask 261120   ;;  %s233_s1 = inlined_call_operand.vmem [shape: f32[32,5], index: 1, kind: input, shape index: {}]   ;;  %s234_s0 = inlined_call_operand.vmem [shape: f32[8,32], index: 0, kind: input, shape index: {}]   ;;  %s235_s2 = inlined_call_operand.vmem [shape: f32[1,5], index: 2, kind: input, shape index: {}]   ;;  %s236_s3 = inlined_call_operand.vmem [shape: f32[8,3], index: 3, kind: output, shape index: {}]  }
   0x1   :  { %165 = vmatprep.subr.bf16.mxu0 %v179_v0  ;;  %v15_v1 = vld [vmem:[%s233_s1] sm:$0xff]  ;;  %v16_v2 = vld [vmem:[%s233_s1 + $0x8] sm:$0xff]  ;;  %v17_v3 = vld [vmem:[%s233_s1 + $0x10] sm:$0xff]  ;;  %162 = vmatprep.mubr.msk.f32.mxu0 %vm180_vm0, %v181_v4  ;;  %vm100_vm2 = vcmask 31744   ;;  %v104_v14 = vlaneseq  ;;  %vm135_vm5 = vcmask 7168   ;;  %vm138_vm6 = vcmask 15368  }
   0x2   :  { %v166_v5 = vpack.c.bf16 %v16_v2, %v15_v1  ;;  %v18_v6 = vld [vmem:[%s233_s1 + $0x18] sm:$0xff]  ;;  %v14_v8 = vld [vmem:[%s234_s0] sm:$0xff]  ;;  %s182_s0 = smov 124   ;;  %vm141_vm7 = vcmask 23568  }
   0x3   :  { %v169_v7 = vpack.c.bf16 %v18_v6, %v17_v3  ;;  %v147_v9 = vld [vmem:[%s235_s2] ss:$0 sm:$0xff]  ;;  %v105_v15 = vand.u32 127, %v104_v14 }
   0x4   :  { %167 = vmatpush3.bf16.msra.mxu0 %v166_v5 }
   0x5   :  { %168 = vmatprep.subr.bf16.mxu0 %v179_v0 }
   0x8   :  { %170 = vmatpush3.bf16.msra.mxu0 %v169_v7 }
   0xb   :  { %163 = vmatmul.mubr.msk.f32.vlgmr.msra.gmra.mrb[0].mxu0 %vm26_vm1, %v14_v8 }
  0xde   :  { %v96_v10 = vpop.f32.mrb[0].mxu0 }
  0xdf   :  { %v97_v11 = vadd.f32 %v147_v9, %v96_v10  ;;  %v164_v12 = vpop.f32.mrb[1].mxu0 }
  0xe1   :  { %v101_v13 = vsel %vm100_vm2, %v97_v11, -inf }
  0xe2   :  { %102 = vmax.xlane.f32.xlu0 %v101_v13 }
 0x16f   :  { %v103_v16 = vpop.xlane.xlu0 %102 }
 0x170   :  { %vm106_vm3 = vcmp.eq.f32.partialorder %v97_v11, %v103_v16  ;;  %v123_v17 = vsub.f32 %v97_v11, %v103_v16 }
 0x171   :  { %v107_v18 = vsel %vm106_vm3, %v105_v15, 4 }
 0x172   :  { %v124_v19 = vmul.f32 1.442695, %v123_v17  ;;  %v108_v20 = vsel %vm100_vm2, %v107_v18, 2147483647 }
 0x173   :  { %v110_v21 = vshra.s32 %v108_v20, 16  ;;  %v109_v25 = vand.u32 65535, %v108_v20 }
 0x174   :  { %175 = vpow2.f32 %v124_v19 }
 0x175   :  { %v112_v22 = vcvt.s32.f32 %v110_v21  ;;  %v111_v27 = vcvt.s32.f32 %v109_v25 }
 0x177   :  { %113 = vmin.xlane.f32.xlu0 %v112_v22 }
 0x17e   :  { %v176_v23 = vpop.eup %175 }
 0x17f   :  { %v126_v24 = vsel %vm100_vm2, %v176_v23, 0.0 }
 0x180   :  { %127 = vadd.xlane.f32.xlu1 %v126_v24 }
 0x18d   :  { %132 = vrot.lane.b32.xlu0 %v97_v11, %s182_s0 }
 0x204   :  { %v114_v26 = vpop.xlane.xlu0 %113 }
 0x205   :  { %vm115_vm4 = vcmp.eq.f32.partialorder %v112_v22, %v114_v26  ;;  %v120_v34 = vcvt.f32.s32 %v114_v26 }
 0x206   :  { %v116_v28 = vsel %vm115_vm4, %v111_v27, inf }
 0x207   :  { %117 = vmin.xlane.f32.xlu1 %v116_v28  ;;  %v121_v36 = vshll.u32 %v120_v34, 16 }
 0x208   :  { %v133_v29 = vpop.permute.xlu0 %132 }
 0x209   :  { %136 = vst.msk [vmem:[%s236_s3] sm:$0xff] %vm135_vm5, %v133_v29 }
 0x20d   :  { %v128_v30 = vpop.xlane.xlu1 %127 }
 0x20e   :  { %177 = vlog2.f32 %v128_v30 }
 0x218   :  { %v178_v31 = vpop.eup %177 }
 0x219   :  { %v130_v32 = vmul.f32 0.6931472, %v178_v31 }
 0x21b   :  { %v137_v33 = vsub.f32 0.0, %v130_v32 }
 0x21d   :  { %139 = vst.msk [vmem:[%s236_s3] sm:$0xff] %vm138_vm6, %v137_v33 }
 0x294   :  { %v118_v35 = vpop.xlane.xlu1 %117 }
 0x295   :  { %v119_v37 = vcvt.f32.s32 %v118_v35 }
 0x297   :  { %v122_v38 = vadd.s32 %v121_v36, %v119_v37 }
 0x299   :  { %142 = vst.msk [vmem:[%s236_s3] sm:$0xff] %vm141_vm7, %v122_v38 }

</bundles_post_ra>
